<compile_context>
chip_gen: v7x
topology: tpu7x:2x2x1
jax: 0.10.0
libtpu: 0.0.40
codegen_flags: <defaults>
</compile_context>

<pallas_src>
import functools
import math

import jax
import jax.numpy as jnp
import numpy as np
from jax.experimental import pallas as pl
from jax.experimental.pallas import tpu as pltpu

SCALE = 30.0
MARGIN = 0.3
COS_M = math.cos(MARGIN)
SIN_M = math.sin(MARGIN)
THRESHOLD = math.cos(math.pi - MARGIN)
MM = math.sin(math.pi - MARGIN) * MARGIN
EPS = 1e-12          # F.normalize eps
NEG_BIG = -1e30      # mask value for padded class columns


def _round_up(v, m):
    return (v + m - 1) // m * m


def _curricular_tile_kernel(xn_ref, wnt_ref, lbl_ref, ftl_ref, ctm_ref, t_ref,
                            loss_ref, corr_ref, m_scr, l_scr, *, num_classes):
    """One (TN, TC) tile of the streaming CurricularFace forward."""
    ci = pl.program_id(1)

    @pl.when(ci == 0)
    def _init():
        m_scr[...] = jnp.full_like(m_scr, -jnp.inf)
        l_scr[...] = jnp.zeros_like(l_scr)

    # cos block on the MXU (bf16 inputs, f32 accumulation), clamped like torch.
    cos = jnp.dot(xn_ref[...], wnt_ref[...], preferred_element_type=jnp.float32)
    cos = jnp.clip(cos, -1.0, 1.0)
    tn, tc = cos.shape

    lbl = lbl_ref[...]          # (TN, 1) int32   class labels
    ftl = ftl_ref[...]          # (TN, 1) f32     final (margin-adjusted) target logit
    ctm = ctm_ref[...]          # (TN, 1) f32     cos(theta + m)
    t_new = t_ref[0, 0]         # scalar f32 from SMEM (already-updated buffer t)

    col = ci * tc + jax.lax.broadcasted_iota(jnp.int32, (tn, tc), 1)
    onehot = col == lbl
    valid = col < num_classes

    # hard-example reweight -> target scatter -> scale -> pad-column mask,
    # fused into a single where-chain to keep (TN, TC) temporaries minimal.
    logits = jnp.where(
        valid,
        SCALE * jnp.where(onehot, ftl,
                          jnp.where(cos > ctm, cos * (t_new + cos), cos)),
        NEG_BIG)

    # online softmax accumulation across C tiles
    m_prev = m_scr[...]
    m_new = jnp.maximum(m_prev, jnp.max(logits, axis=-1, keepdims=True))
    l_scr[...] = (l_scr[...] * jnp.exp(m_prev - m_new)
                  + jnp.sum(jnp.exp(logits - m_new), axis=-1, keepdims=True))
    m_scr[...] = m_new

    @pl.when(ci == pl.num_programs(1) - 1)
    def _finalize():
        lse = m_scr[...] + jnp.log(l_scr[...])
        tgt = SCALE * ftl
        loss_ref[...] = lse - tgt                              # per-row CE loss
        # ties count as correct (matches the reference's `tgt >= row_max`)
        corr_ref[...] = (tgt >= m_scr[...]).astype(jnp.float32)


def curricular_face_forward(x, label, weight, t, *,
                            tile_n=None, tile_c=None,
                            matmul_dtype=jnp.bfloat16):
    """x: (b, o, D) f32, label: (b,) or (b*o,) int, weight: (C, D), t: scalar.

    Returns (loss, top-1 accuracy %, updated running buffer t)."""
    b, o, d = x.shape
    n = b * o
    c = weight.shape[0]

    x2 = x.reshape(n, d).astype(jnp.float32)
    if label.shape[0] != n:
        label = jnp.repeat(label, o)              # label.repeat_interleave(o)
    label = label.astype(jnp.int32)
    wf = weight.astype(jnp.float32)

    # ---------------- phase 0: O(N*D), plain JAX (negligible vs N*C*D) -------
    # x * rsqrt(max(|x|^2, eps^2)) == F.normalize(x) (1/max(norm, eps)).
    xn = x2 * jax.lax.rsqrt(jnp.maximum(jnp.sum(x2 * x2, -1, keepdims=True), EPS * EPS))
    wn = wf * jax.lax.rsqrt(jnp.maximum(jnp.sum(wf * wf, -1, keepdims=True), EPS * EPS))
    w_lbl = jnp.take(wn, label, axis=0)                                  # (N, D)
    tl = jnp.clip(jnp.sum(xn * w_lbl, -1, keepdims=True), -1.0, 1.0)     # target_logit
    sin_t = jnp.sqrt(jnp.maximum(1.0 - tl * tl, 0.0))
    ctm = tl * COS_M - sin_t * SIN_M                                     # cos(theta+m)
    ftl = jnp.where(tl > THRESHOLD, ctm, tl - MM)                        # final target
    t_new = jnp.mean(tl) * 0.01 + 0.99 * jnp.asarray(t, jnp.float32)     # buffer update

    # ---------------- tiling / padding ---------------------------------------
    d_pad = _round_up(d, 128)
    tn = tile_n or min(256, _round_up(n, 16))     # sublane tile (mult of 16 for bf16)
    tc = tile_c or min(512, _round_up(c, 128))    # lane tile (mult of 128)
    assert tn % 16 == 0 and tc % 128 == 0
    n_pad = _round_up(n, tn)
    c_pad = _round_up(c, tc)

    xn_p = jnp.pad(xn, ((0, n_pad - n), (0, d_pad - d))).astype(matmul_dtype)
    wnt_p = jnp.pad(wn.T, ((0, d_pad - d), (0, c_pad - c))).astype(matmul_dtype)
    lbl_p = jnp.pad(label.reshape(n, 1), ((0, n_pad - n), (0, 0)))
    ftl_p = jnp.pad(ftl, ((0, n_pad - n), (0, 0)))
    ctm_p = jnp.pad(ctm, ((0, n_pad - n), (0, 0)))
    t_arr = t_new.reshape(1, 1)

    grid = (n_pad // tn, c_pad // tc)
    kernel = functools.partial(_curricular_tile_kernel, num_classes=c)
    row_spec = pl.BlockSpec((tn, 1), lambda ni, ci: (ni, 0))
    itemsize = jnp.dtype(matmul_dtype).itemsize
    bytes_accessed = int(grid[0] * c_pad * d_pad * itemsize    # streamed weight tiles
                         + n_pad * d_pad * itemsize            # x (resident per row tile)
                         + 5 * n_pad * 4)                      # per-row vectors + outputs

    loss_rows, corr_rows = pl.pallas_call(
        kernel,
        out_shape=(jax.ShapeDtypeStruct((n_pad, 1), jnp.float32),
                   jax.ShapeDtypeStruct((n_pad, 1), jnp.float32)),
        grid_spec=pltpu.PrefetchScalarGridSpec(
            num_scalar_prefetch=0,
            grid=grid,
            in_specs=[
                pl.BlockSpec((tn, d_pad), lambda ni, ci: (ni, 0)),  # xn tile (held over C)
                pl.BlockSpec((d_pad, tc), lambda ni, ci: (0, ci)),  # weight^T tile (streamed)
                row_spec,                                           # labels
                row_spec,                                           # final target logit
                row_spec,                                           # cos_theta_m
                pl.BlockSpec(memory_space=pltpu.MemorySpace.SMEM),  # scalar t
            ],
            out_specs=(row_spec, row_spec),
            scratch_shapes=[pltpu.VMEM((tn, 1), jnp.float32),       # running row max
                            pltpu.VMEM((tn, 1), jnp.float32)],      # running sum-exp
        ),
        compiler_params=pltpu.CompilerParams(
            dimension_semantics=("parallel", "arbitrary")),
        cost_estimate=pl.CostEstimate(
            flops=2 * n_pad * c_pad * d_pad,
            transcendentals=n_pad * c_pad,
            bytes_accessed=bytes_accessed),
    )(xn_p, wnt_p, lbl_p, ftl_p, ctm_p, t_arr)

    loss = jnp.sum(loss_rows[:n, 0]) / n
    acc = jnp.sum(corr_rows[:n, 0]) / n * 100.0
    return loss, acc, t_new


def reference_forward(x, label, weight, t, matmul_dtype=jnp.bfloat16):
    """Pure-JAX mirror of the PyTorch forward.

    The big cos matrix uses the same matmul dtype as the kernel (bf16 inputs,
    f32 accumulation); the target-logit / buffer-t path is kept in f32, exactly
    like the kernel's phase-0."""
    b, o, d = x.shape
    n = b * o
    x2 = x.reshape(n, d).astype(jnp.float32)
    if label.shape[0] != n:
        label = jnp.repeat(label, o)
    wf = weight.astype(jnp.float32)
    xn = x2 * jax.lax.rsqrt(jnp.maximum(jnp.sum(x2 * x2, -1, keepdims=True), EPS * EPS))
    wn = wf * jax.lax.rsqrt(jnp.maximum(jnp.sum(wf * wf, -1, keepdims=True), EPS * EPS))
    cos = jnp.clip(jnp.dot(xn.astype(matmul_dtype), wn.T.astype(matmul_dtype),
                           preferred_element_type=jnp.float32), -1.0, 1.0)
    tl = jnp.clip(jnp.sum(xn * wn[label], -1, keepdims=True), -1.0, 1.0)
    sin_t = jnp.sqrt(jnp.maximum(1.0 - tl * tl, 0.0))
    ctm = tl * COS_M - sin_t * SIN_M
    mask = cos > ctm
    ftl = jnp.where(tl > THRESHOLD, ctm, tl - MM)
    t_new = jnp.mean(tl) * 0.01 + 0.99 * jnp.asarray(t, jnp.float32)
    cos = jnp.where(mask, cos * (t_new + cos), cos)
    onehot = jax.nn.one_hot(label, weight.shape[0], dtype=bool)
    cos = jnp.where(onehot, ftl, cos)
    logits = cos * SCALE
    lse = jax.scipy.special.logsumexp(logits, axis=-1)
    tgt = SCALE * ftl[:, 0]
    loss = jnp.mean(lse - tgt)
    acc = jnp.mean((tgt >= logits.max(-1)).astype(jnp.float32)) * 100.0
    return loss, acc, t_new


if __name__ == "__main__":
    embedding_dim, num_classes = 32, 300
    b, o = 5, 5                                   # N = 25 rows

    key = jax.random.PRNGKey(0)
    kx, kw, kl = jax.random.split(key, 3)
    x = jax.random.normal(kx, (b, o, embedding_dim), jnp.float32)
    # nn.init.normal_(weight, std=0.01), shape (num_classes, embedding_dim)
    weight = 0.01 * jax.random.normal(kw, (num_classes, embedding_dim), jnp.float32)
    label = jax.random.randint(kl, (b,), 0, num_classes, jnp.int32)
    t0 = jnp.zeros((), jnp.float32)               # register_buffer('t', zeros(1))

    # Small tiles so the demo exercises the (row, class) grid, padding and the
    # valid-column masking: grid = (2, 3), rows 25->32, classes 300->384.
    loss, acc, t_new = curricular_face_forward(x, label, weight, t0,
                                               tile_n=16, tile_c=128)
    jax.block_until_ready((loss, acc, t_new))

    ref_loss, ref_acc, ref_t = reference_forward(x, label, weight, t0)
    assert np.allclose(float(loss), float(ref_loss), rtol=2e-3, atol=2e-3), \
        (float(loss), float(ref_loss))
    assert np.allclose(float(acc), float(ref_acc), atol=1e-3), \
        (float(acc), float(ref_acc))
    assert np.allclose(float(t_new), float(ref_t), rtol=1e-5, atol=1e-6), \
        (float(t_new), float(ref_t))

    print("KERNEL_OK")
</pallas_src>

<mosaic_0001>
module attributes {stable_mosaic.version = 11 : i64} {
  func.func @_curricular_tile_kernel(%arg0: i32, %arg1: i32, %arg2: memref<16x128xbf16, #tpu.memory_space<vmem>>, %arg3: memref<128x128xbf16, #tpu.memory_space<vmem>>, %arg4: memref<16x1xi32, #tpu.memory_space<vmem>>, %arg5: memref<16x1xf32, #tpu.memory_space<vmem>>, %arg6: memref<16x1xf32, #tpu.memory_space<vmem>>, %arg7: memref<1x1xf32, #tpu.memory_space<smem>>, %arg8: memref<16x1xf32, #tpu.memory_space<vmem>>, %arg9: memref<16x1xf32, #tpu.memory_space<vmem>>, %arg10: memref<16x1xf32, #tpu.memory_space<vmem>>, %arg11: memref<16x1xf32, #tpu.memory_space<vmem>>) attributes {dimension_semantics = [#tpu.dimension_semantics<parallel>, #tpu.dimension_semantics<arbitrary>], iteration_bounds = array<i64: 2, 3>, scalar_prefetch = 0 : i64, scratch_operands = 2 : i64, tpu.core_type = #tpu.core_type<tc>, window_params = [{transform_indices = @transform_0, window_bounds = array<i64: 16, 128>}, {transform_indices = @transform_1, window_bounds = array<i64: 128, 128>}, {transform_indices = @transform_2, window_bounds = array<i64: 16, 1>}, {transform_indices = @transform_3, window_bounds = array<i64: 16, 1>}, {transform_indices = @transform_4, window_bounds = array<i64: 16, 1>}, {transform_indices = @transform_5, window_bounds = array<i64: 1, 1>}, {transform_indices = @transform_6, window_bounds = array<i64: 16, 1>}, {transform_indices = @transform_7, window_bounds = array<i64: 16, 1>}]} {
    %c0_i32 = arith.constant 0 : i32
    %0 = arith.cmpi eq, %arg1, %c0_i32 : i32
    %1 = arith.extui %0 : i1 to i32
    %c0_i32_0 = arith.constant 0 : i32
    %2 = arith.cmpi ne, %1, %c0_i32_0 : i32
    scf.if %2 {
      %cst_27 = arith.constant 0xFF800000 : f32
      %54 = vector.broadcast %cst_27 : f32 to vector<16x1xf32>
      %c0_28 = arith.constant 0 : index
      %c0_29 = arith.constant 0 : index
      %55 = vector.load %arg10[%c0_28, %c0_29] : memref<16x1xf32, #tpu.memory_space<vmem>>, vector<16x1xf32>
      tpu.vector_store %arg10[%c0_28, %c0_29], %54 {strides = array<i32>} : memref<16x1xf32, #tpu.memory_space<vmem>>, vector<16x1xf32>,
      %cst_30 = arith.constant 0.000000e+00 : f32
      %56 = vector.broadcast %cst_30 : f32 to vector<16x1xf32>
      %c0_31 = arith.constant 0 : index
      %c0_32 = arith.constant 0 : index
      %57 = vector.load %arg11[%c0_31, %c0_32] : memref<16x1xf32, #tpu.memory_space<vmem>>, vector<16x1xf32>
      tpu.vector_store %arg11[%c0_31, %c0_32], %56 {strides = array<i32>} : memref<16x1xf32, #tpu.memory_space<vmem>>, vector<16x1xf32>,
    } else {
    }
    %c0 = arith.constant 0 : index
    %c0_1 = arith.constant 0 : index
    %3 = vector.load %arg2[%c0, %c0_1] : memref<16x128xbf16, #tpu.memory_space<vmem>>, vector<16x128xbf16>
    %c0_2 = arith.constant 0 : index
    %c0_3 = arith.constant 0 : index
    %4 = vector.load %arg3[%c0_2, %c0_3] : memref<128x128xbf16, #tpu.memory_space<vmem>>, vector<128x128xbf16>
    %cst = arith.constant dense<0.000000e+00> : vector<16x128xf32>
    %5 = tpu.matmul %3, %4, %cst {dimension_numbers = #tpu.dot_dimension_numbers<[1], [0], [0], [1], [0, 0, 1, 1], [], []>} : vector<16x128xbf16>, vector<128x128xbf16>, vector<16x128xf32> -> vector<16x128xf32>
    %cst_4 = arith.constant -1.000000e+00 : f32
    %cst_5 = arith.constant 1.000000e+00 : f32
    %6 = vector.broadcast %cst_4 : f32 to vector<16x128xf32>
    %7 = arith.maximumf %6, %5 : vector<16x128xf32>
    %8 = vector.broadcast %cst_5 : f32 to vector<16x128xf32>
    %9 = arith.minimumf %8, %7 : vector<16x128xf32>
    %c0_6 = arith.constant 0 : index
    %c0_7 = arith.constant 0 : index
    %10 = vector.load %arg4[%c0_6, %c0_7] : memref<16x1xi32, #tpu.memory_space<vmem>>, vector<16x1xi32>
    %c0_8 = arith.constant 0 : index
    %c0_9 = arith.constant 0 : index
    %11 = vector.load %arg5[%c0_8, %c0_9] : memref<16x1xf32, #tpu.memory_space<vmem>>, vector<16x1xf32>
    %c0_10 = arith.constant 0 : index
    %c0_11 = arith.constant 0 : index
    %12 = vector.load %arg6[%c0_10, %c0_11] : memref<16x1xf32, #tpu.memory_space<vmem>>, vector<16x1xf32>
    %c0_12 = arith.constant 0 : index
    %c0_13 = arith.constant 0 : index
    %13 = memref.load %arg7[%c0_12, %c0_13] : memref<1x1xf32, #tpu.memory_space<smem>>
    %c128_i32 = arith.constant 128 : i32
    %14 = arith.muli %arg1, %c128_i32 : i32
    %15 = tpu.iota {dimensions = array<i32: 1>} : vector<16x128xi32>
    %16 = vector.broadcast %14 : i32 to vector<16x128xi32>
    %17 = arith.addi %16, %15 : vector<16x128xi32>
    %18 = vector.broadcast %10 : vector<16x1xi32> to vector<16x128xi32>
    %19 = arith.cmpi eq, %17, %18 : vector<16x128xi32>
    %c300_i32 = arith.constant 300 : i32
    %20 = vector.broadcast %c300_i32 : i32 to vector<16x128xi32>
    %21 = arith.cmpi slt, %17, %20 : vector<16x128xi32>
    %22 = vector.broadcast %12 : vector<16x1xf32> to vector<16x128xf32>
    %23 = arith.cmpf ogt, %9, %22 : vector<16x128xf32>
    %24 = vector.broadcast %13 : f32 to vector<16x128xf32>
    %25 = arith.addf %24, %9 : vector<16x128xf32>
    %26 = arith.mulf %9, %25 : vector<16x128xf32>
    %27 = arith.select %23, %26, %9 : vector<16x128xi1>, vector<16x128xf32>
    %28 = vector.shape_cast %11 : vector<16x1xf32> to vector<16x1xf32>
    %29 = vector.broadcast %28 : vector<16x1xf32> to vector<16x128xf32>
    %30 = arith.select %19, %29, %27 : vector<16x128xi1>, vector<16x128xf32>
    %cst_14 = arith.constant 3.000000e+01 : f32
    %31 = vector.broadcast %cst_14 : f32 to vector<16x128xf32>
    %32 = arith.mulf %31, %30 : vector<16x128xf32>
    %cst_15 = arith.constant -1.000000e+30 : f32
    %33 = vector.broadcast %cst_15 : f32 to vector<16x128xf32>
    %34 = arith.select %21, %32, %33 : vector<16x128xi1>, vector<16x128xf32>
    %c0_16 = arith.constant 0 : index
    %c0_17 = arith.constant 0 : index
    %35 = vector.load %arg10[%c0_16, %c0_17] : memref<16x1xf32, #tpu.memory_space<vmem>>, vector<16x1xf32>
    %cst_18 = arith.constant dense<0xFF800000> : vector<16xf32>
    %36 = vector.multi_reduction <maximumf>, %34, %cst_18 [1] : vector<16x128xf32> to vector<16xf32>
    %37 = vector.shape_cast %36 : vector<16xf32> to vector<16x1xf32>
    %38 = arith.maximumf %35, %37 : vector<16x1xf32>
    %c0_19 = arith.constant 0 : index
    %c0_20 = arith.constant 0 : index
    %39 = vector.load %arg11[%c0_19, %c0_20] : memref<16x1xf32, #tpu.memory_space<vmem>>, vector<16x1xf32>
    %40 = arith.subf %35, %38 : vector<16x1xf32>
    %41 = math.exp %40 : vector<16x1xf32>
    %42 = arith.mulf %39, %41 : vector<16x1xf32>
    %43 = vector.broadcast %38 : vector<16x1xf32> to vector<16x128xf32>
    %44 = arith.subf %34, %43 : vector<16x128xf32>
    %45 = math.exp %44 : vector<16x128xf32>
    %cst_21 = arith.constant dense<0.000000e+00> : vector<16xf32>
    %46 = vector.multi_reduction <add>, %45, %cst_21 [1] : vector<16x128xf32> to vector<16xf32>
    %47 = vector.shape_cast %46 : vector<16xf32> to vector<16x1xf32>
    %48 = arith.addf %42, %47 : vector<16x1xf32>
    %c0_22 = arith.constant 0 : index
    %c0_23 = arith.constant 0 : index
    %49 = vector.load %arg11[%c0_22, %c0_23] : memref<16x1xf32, #tpu.memory_space<vmem>>, vector<16x1xf32>
    tpu.vector_store %arg11[%c0_22, %c0_23], %48 {strides = array<i32>} : memref<16x1xf32, #tpu.memory_space<vmem>>, vector<16x1xf32>,
    %c0_24 = arith.constant 0 : index
    %c0_25 = arith.constant 0 : index
    %50 = vector.load %arg10[%c0_24, %c0_25] : memref<16x1xf32, #tpu.memory_space<vmem>>, vector<16x1xf32>
    tpu.vector_store %arg10[%c0_24, %c0_25], %38 {strides = array<i32>} : memref<16x1xf32, #tpu.memory_space<vmem>>, vector<16x1xf32>,
    %c2_i32 = arith.constant 2 : i32
    %51 = arith.cmpi eq, %arg1, %c2_i32 : i32
    %52 = arith.extui %51 : i1 to i32
    %c0_i32_26 = arith.constant 0 : i32
    %53 = arith.cmpi ne, %52, %c0_i32_26 : i32
    scf.if %53 {
      %c0_27 = arith.constant 0 : index
      %c0_28 = arith.constant 0 : index
      %54 = vector.load %arg10[%c0_27, %c0_28] : memref<16x1xf32, #tpu.memory_space<vmem>>, vector<16x1xf32>
      %c0_29 = arith.constant 0 : index
      %c0_30 = arith.constant 0 : index
      %55 = vector.load %arg11[%c0_29, %c0_30] : memref<16x1xf32, #tpu.memory_space<vmem>>, vector<16x1xf32>
      %56 = math.log %55 : vector<16x1xf32>
      %57 = arith.addf %54, %56 : vector<16x1xf32>
      %cst_31 = arith.constant 3.000000e+01 : f32
      %58 = vector.broadcast %cst_31 : f32 to vector<16x1xf32>
      %59 = arith.mulf %58, %11 : vector<16x1xf32>
      %60 = arith.subf %57, %59 : vector<16x1xf32>
      %c0_32 = arith.constant 0 : index
      %c0_33 = arith.constant 0 : index
      %61 = vector.load %arg8[%c0_32, %c0_33] : memref<16x1xf32, #tpu.memory_space<vmem>>, vector<16x1xf32>
      tpu.vector_store %arg8[%c0_32, %c0_33], %60 {strides = array<i32>} : memref<16x1xf32, #tpu.memory_space<vmem>>, vector<16x1xf32>,
      %c0_34 = arith.constant 0 : index
      %c0_35 = arith.constant 0 : index
      %62 = vector.load %arg10[%c0_34, %c0_35] : memref<16x1xf32, #tpu.memory_space<vmem>>, vector<16x1xf32>
      %63 = arith.cmpf oge, %59, %62 : vector<16x1xf32>
      %64 = arith.extui %63 : vector<16x1xi1> to vector<16x1xi32>
      %65 = arith.sitofp %64 : vector<16x1xi32> to vector<16x1xf32>
      %c0_36 = arith.constant 0 : index
      %c0_37 = arith.constant 0 : index
      %66 = vector.load %arg9[%c0_36, %c0_37] : memref<16x1xf32, #tpu.memory_space<vmem>>, vector<16x1xf32>
      tpu.vector_store %arg9[%c0_36, %c0_37], %65 {strides = array<i32>} : memref<16x1xf32, #tpu.memory_space<vmem>>, vector<16x1xf32>,
    } else {
    }
    return
  }
  func.func @transform_0(%arg0: i32, %arg1: i32) -> (i32, i32) {
    %c0_i32 = arith.constant 0 : i32
    %c0_i32_0 = arith.constant 0 : i32
    return %arg0, %c0_i32 : i32, i32
  }
  func.func @transform_1(%arg0: i32, %arg1: i32) -> (i32, i32) {
    %c0_i32 = arith.constant 0 : i32
    %c0_i32_0 = arith.constant 0 : i32
    return %c0_i32, %arg1 : i32, i32
  }
  func.func @transform_2(%arg0: i32, %arg1: i32) -> (i32, i32) {
    %c0_i32 = arith.constant 0 : i32
    %c0_i32_0 = arith.constant 0 : i32
    return %arg0, %c0_i32 : i32, i32
  }
  func.func @transform_3(%arg0: i32, %arg1: i32) -> (i32, i32) {
    %c0_i32 = arith.constant 0 : i32
    %c0_i32_0 = arith.constant 0 : i32
    return %arg0, %c0_i32 : i32, i32
  }
  func.func @transform_4(%arg0: i32, %arg1: i32) -> (i32, i32) {
    %c0_i32 = arith.constant 0 : i32
    %c0_i32_0 = arith.constant 0 : i32
    return %arg0, %c0_i32 : i32, i32
  }
  func.func @transform_5(%arg0: i32, %arg1: i32) -> (i32, i32) {
    %c0_i32 = arith.constant 0 : i32
    %c0_i32_0 = arith.constant 0 : i32
    %c0_i32_1 = arith.constant 0 : i32
    return %c0_i32, %c0_i32_0 : i32, i32
  }
  func.func @transform_6(%arg0: i32, %arg1: i32) -> (i32, i32) {
    %c0_i32 = arith.constant 0 : i32
    %c0_i32_0 = arith.constant 0 : i32
    return %arg0, %c0_i32 : i32, i32
  }
  func.func @transform_7(%arg0: i32, %arg1: i32) -> (i32, i32) {
    %c0_i32 = arith.constant 0 : i32
    %c0_i32_0 = arith.constant 0 : i32
    return %arg0, %c0_i32 : i32, i32
  }
}

</mosaic_0001>

<bundles_post_ra>
// kernel: tpu_custom_call.1
= control target key start
LH: loop header
LB: loop body
LE: loop exit
PB: predicated region body
PF: predicated region fallthrough
CT: control target
= control target key end

     0   :  { %s1366_s0 = inlined_call_operand.vmem [shape: bf16[32,128], index: 0, kind: input, shape index: {}]   ;;  %s1367_s1 = inlined_call_operand.hbm [shape: bf16[128,384], index: 1, kind: input, shape index: {}]   ;;  %s1368_s2 = inlined_call_operand.vmem [shape: s32[32,1], index: 2, kind: input, shape index: {}]   ;;  %s1369_s3 = inlined_call_operand.vmem [shape: f32[32,1], index: 3, kind: input, shape index: {}]   ;;  %s1370_s4 = inlined_call_operand.vmem [shape: f32[32,1], index: 4, kind: input, shape index: {}]   ;;  %s1371_s5 = inlined_call_operand.<no memory space> [shape: f32[1,1], index: 5, kind: input, shape index: {}]   ;;  %s1372_s6 = inlined_call_operand.vmem [shape: f32[32,1], index: 6, kind: output, shape index: {0}]   ;;  %s1373_s7 = inlined_call_operand.vmem [shape: f32[32,1], index: 7, kind: output, shape index: {1}]  }
   0x1   :  { %1374 = sst [smem:[#allocation9_spill]] %s1367_s1 }
   0x2   :  { %13 = sst [smem:[#allocation4]] %s1371_s5 }
   0x3   :  { %14 = vsyncpa [#allocation6], 0 }
   0x4   :  { %16 = vsyncpa [#allocation6 + $0x1], 0  ;;  %s1154_s26 = smov 0   ;;  %s1156_s27 = smov 0  }
   0x5   :  { %s1158_s28 = smov 0   ;;  %s1160_s29 = smov 0  }
   0x6   :  { %s1162_s30 = smov 0   ;;  %s1164_s8 = smov 0  }
   0x7   :  { %s1166_s9 = smov 0   ;;  %s1168_s10 = smov 0  }
   0x8 LB: > { %s833_s5 = sadd.s32 4294967295, %s1099_s10   ;;  %s31_s11 = sadd.s32 1, %s1091_s8  ;;  %s1099_s10 = sphi %s1168_s10, %s22_s10   ;;  %s1095_s9 = sphi %s1166_s9, %s1388_s9   ;;  %s1091_s8 = sphi %s1164_s8, %s1387_s8   ;;  %s1087_s30 = sphi %s1162_s30, %s1386_s30   ;;  %s1083_s29 = sphi %s1160_s29, %s1385_s29   ;;  %s1079_s28 = sphi %s1158_s28, %s1384_s28   ;;  %s1075_s27 = sphi %s1156_s27, %s1383_s27   ;;  %s1071_s26 = sphi %s1154_s26, %s1382_s26  }
   0x9   : > { %p32_p0 = scmp.ge.s32.totalorder %s31_s11, 3  ;;  %s34_s12 = sadd.s32 1, %s1095_s9 }
   0xa   : > { %s67_s13 = sadd.s32 1, %s1079_s28  ;;  %p74_p1 = scmp.ne.s32.totalorder %s1079_s28, %s1075_s27 }
   0xb   : > { %s1390_s11 = smov (%p32_p0, %s31_s11), 0  ;;  %s1392_s12 = smov (!%p32_p0, %s34_s12), %s1095_s9 }
   0xc   : > { %s64_s14 = ssub.s32 %s1091_s8, %s1390_s11  ;;  %p75_p2 = scmp.eq.s32.totalorder %s1099_s10, 0 }
   0xd   : > { %p36_p3 = scmp.ge.s32.totalorder %s1392_s12, 2  ;;  %p65_p4 = scmp.eq.s32.totalorder %s64_s14, 0 }
   0xe   : > { %p1204_p5 = por %p75_p2, %p74_p1  ;;  %p80_p6 = scmp.ne.s32.totalorder %s1075_s27, %s1071_s26 }
   0xf   : > { %s1394_s12 = smov (%p36_p3, %s1392_s12), 0  ;;  %p81_p7 = scmp.eq.s32.totalorder %s833_s5, 0 }
  0x10   : > { %1376 = sst [smem:[#allocation8_spill]] %s1394_s12  ;;  %p906_p8 = scmp.lt.s32.totalorder %s1099_s10, 6 }
  0x11   : > { %s1212_s16 = scalar_select %p65_p4, %s1079_s28, %s67_s13  }
  0x12   : > { %s267_s17 = sand.u32 1, %s1079_s28   ;;  %p1216_p9 = por %p81_p7, %p80_p6 }
  0x13   : > { %s837_s19 = sshll.u32 %s267_s17, 6  ;;  %s838_s20 = sshll.u32 %s1091_s8, 6 }
  0x14   : > { %s1378_s1 = sld [smem:[#allocation9_spill]]  ;;  %s271_s24 = scalar_lea.vmem [#allocation5], %s837_s19 }
  0x15   : > { %s277_s25 = sshll.u32 %s271_s24, 4  ;;  %p1228_p10 = pnand %p906_p8, %p1204_p5  ;;  %s1232_s25 = int_to_ptr.vmem [resolvable:$true] %s277_s25 }
  0x16   : > { %s1235_s5 = scalar_lea.sflag [#allocation6], %s267_s17 }
  0x17   : > { %p1005_p13 = pneg %p1228_p10 }
  0x1a   : > { %s1224_s23 = scalar_lea.hbm %s1378_s1, %s838_s20  ;;  %s1008_s19 = scalar_lea.hbm %s1378_s1, 3072 }
  0x1b   : > { %s1003_s13 = scalar_lea.hbm %s1224_s23, 1024  ;;  %p1009_p2 = scmp.lt.u32.totalorder %s1224_s23, %s1378_s1 }
  0x1c   : > { %p1004_p12 = scmp.ne.s32.totalorder %s1224_s23, %s1003_s13  ;;  %p1010_p3 = scmp.lt.u32.totalorder %s1008_s19, %s1003_s13 }
  0x1d   : > { %p1012_p5 = scmp.lt.u32.totalorder %s1003_s13, %s1224_s23 }
  0x1e   : > { %p1006_p0 = pnand %p1005_p13, %p1004_p12  ;;  %p1011_p4 = por %p1010_p3, %p1009_p2 }
  0x20   : > { %p1007_p1 = pneg %p1006_p0  ;;  %p1013_p6 = por %p1012_p5, %p1011_p4 }
  0x22   : > { %p1014_p7 = pnand %p1013_p6, %p1007_p1 }
  0x24   : > { %1017 = shalt.err (!%p1014_p7)
}
  0x25   : > { %s1018_s17 = scalar_lea.vmem %s1232_s25, 1024  ;;  %s1101_s22 = smov [#allocation5]  }
  0x26   : > { %p1019_p8 = scmp.ne.s32.totalorder %s1232_s25, %s1018_s17  ;;  %s1023_s24 = sshll.u32 %s1101_s22, 4  ;;  %s1024_s24 = int_to_ptr.vmem [resolvable:$false] %s1023_s24 }
  0x27   : > { %s1025_s14 = scalar_lea.vmem %s1024_s24, 2048  ;;  %p1026_p11 = scmp.lt.s32.totalorder %s1232_s25, %s1024_s24 }
  0x28   : > { %p1021_p12 = pnand %p1019_p8, %p1005_p13  ;;  %p1027_p2 = scmp.lt.s32.totalorder %s1025_s14, %s1018_s17 }
  0x2a   : > { %p1022_p0 = pneg %p1021_p12  ;;  %p1028_p3 = por %p1027_p2, %p1026_p11 }
  0x2c   : > { %p1029_p4 = pnand %p1028_p3, %p1022_p0 }
  0x2e   : > { %1032 = shalt.err (!%p1029_p4)
}
  0x2f   : > { %s1102_s13 = smov 192   ;;  %s1103_s15 = smov 64  }
  0x30   : > { %s1104_s19 = smov 4   ;;  %p312_p13 = scmp.lt.s32.totalorder %s1099_s10, 7 }
  0x31   : > { %905 = dma.hbm_to_vmem [thread:$0]  (!%p1228_p10), %s1224_s23, 1024, %s1232_s25, %s1235_s5, %s1102_s13, %s1103_s15, %s1104_s19  }
  0x32   : > { %p1380_p1 = scmp.ge.s32.totalorder %s1099_s10, 1 }
  0x34   : > { %p313_p5 = pnand %p1380_p1, %p312_p13 }
  0x35   : > { %s318_s20 = sand.u32 (!%p313_p5), 1, %s1075_s27  }
  0x36   : > { %316 = sbr.rel (%p313_p5) target bundleno = 786 (0x312), region = 44  ;;  %s840_s21 = sshll.u32 (!%p313_p5), %s318_s20, 6 }
  0x37   : > { %s319_s17 = scalar_lea.sflag (!%p313_p5), [#allocation6], %s318_s20  ;;  %s1267_s22 = scalar_lea.vmem (!%p313_p5), [#allocation5], %s840_s21 }
  0x3d   : > { %1066 = dma.done.wait (%p1216_p9), %s319_s17, 1024  }
  0x3e   : > { %1068 = vsyncadd (%p1216_p9), %s319_s17, 4294966272  ;;  %s841_s24 = sshll.u32 %s1087_s30, 1  ;;  %p853_p9 = scmp.ne.s32.totalorder %s1083_s29, 0 }
  0x3f   : > { %p379_p11 = scmp.lt.s32.totalorder %s841_s24, 3  ;;  %vm419_vm0 = vcmask (!%p853_p9), 7168   ;;  %v1105_v0 = vmov (!%p853_p9), -inf   ;;  %v1106_v1 = vmov (!%p853_p9), 0.0  }
  0x40   : > { %418 = sbr.rel (%p853_p9) target bundleno = 71 (0x47), region = 52  ;;  %420 = vst.msk [vmem:[#allocation2] sm:$0xff] (!%p853_p9), %vm419_vm0, %v1105_v0  ;;  %421 = vst.msk [vmem:[#allocation2 + $0x8] sm:$0xff] (!%p853_p9), %vm419_vm0, %v1105_v0 }
  0x41   : > { %s1396_s24 = smov (!%p379_p11, %s841_s24), 3  ;;  %422 = vst.msk [vmem:[#allocation3] sm:$0xff] (!%p853_p9), %vm419_vm0, %v1106_v1  ;;  %423 = vst.msk [vmem:[#allocation3 + $0x8] sm:$0xff] (!%p853_p9), %vm419_vm0, %v1106_v1 }
  0x42   : > { %s842_s23 = sshll.u32 %s1396_s24, 2  ;;  %s844_s25 = sshll.u32 %s1396_s24, 3 }
  0x43   : > { %s1277_s14 = scalar_lea.vmem %s1366_s0, %s842_s23  ;;  %s1282_s19 = scalar_lea.vmem %s1368_s2, %s844_s25 }
  0x44   : > { %s1287_s18 = scalar_lea.vmem %s1369_s3, %s844_s25  ;;  %s1292_s1 = scalar_lea.vmem %s1370_s4, %s844_s25 }
  0x45   : > { %s1297_s23 = scalar_lea.vmem %s1372_s6, %s844_s25  ;;  %s1302_s13 = scalar_lea.vmem %s1373_s7, %s844_s25 }
  0x47 PF: > { %v982_v2 = vld [vmem:[%s1267_s22] sm:$0xff]   ;;  %v1107_v3 = vmov 0.0   ;;  %v983_v4 = vld [vmem:[%s1267_s22 + $0x8] sm:$0xff]   ;;  %vm1108_vm1 = vmmov 0   ;;  %v1109_v5 = vmov 0   ;;  %v984_v6 = vld [vmem:[%s1267_s22 + $0x10] sm:$0xff]   ;;  %v549_v20 = vlaneseq }
  0x48   : > { %880 = vmatprep.subr.bf16.mxu0 %v1107_v3  ;;  %896 = vmatprep.mubr.msk.bf16.mxu0 %vm1108_vm1, %v1107_v3  ;;  %v545_v7 = vld [vmem:[%s1292_s1] sm:$0xff]  ;;  %v985_v9 = vld [vmem:[%s1267_s22 + $0x18] sm:$0xff]   ;;  %v546_v10 = vld [vmem:[%s1292_s1 + $0x8] sm:$0xff]  ;;  %s547_s1 = sld [smem:[#allocation4]]  ;;  %s865_s12 = sshll.u32 %s1083_s29, 7  ;;  %vm637_vm7 = vcmask 7168  }
  0x49   : > { %881 = vmatpush3.bf16.msra.mxu0 %v982_v2  ;;  %981 = vset.pattern.permute.xlu1 %v1109_v5  ;;  %v541_v8 = vld [vmem:[%s1282_s19] sm:$0xff]  ;;  %v542_v11 = vld [vmem:[%s1282_s19 + $0x8] sm:$0xff]  ;;  %v988_v16 = vld [vmem:[%s1267_s22 + $0x30] sm:$0xff]   ;;  %v550_v22 = vand.u32 127, %v549_v20  ;;  %v551_v23 = vstv %s865_s12  ;;  %p866_p10 = scmp.ne.s32.totalorder %s1083_s29, 2 }
  0x4a   : > { %882 = vmatprep.subr.bf16.mxu0 %v1107_v3  ;;  %980 = vset.pattern.permute.xlu0 %v1109_v5  ;;  %v986_v12 = vld [vmem:[%s1267_s22 + $0x20] sm:$0xff]   ;;  %v1318_v14 = vld [vmem:[%s1287_s18 + $0x8] sm:$0xff]  ;;  %v989_v17 = vld [vmem:[%s1267_s22 + $0x38] sm:$0xff]   ;;  %v1110_v20 = vmov (!%p866_p10), 0.0  }
  0x4b   : > { %564 = vperm.xlu0 %980, %v545_v7   ;;  %554 = vperm.xlu1 %981, %v541_v8   ;;  %v1315_v13 = vld [vmem:[%s1287_s18] sm:$0xff]  ;;  %v987_v15 = vld [vmem:[%s1267_s22 + $0x28] sm:$0xff]   ;;  %v552_v30 = vadd.s32 %v551_v23, %v550_v22  ;;  %v606_v5 = vld [vmem:[#allocation3 + $0x8] sm:$0xff] }
  0x4c   : > { %v990_v18 = vld [vmem:[%s1277_s14] sm:$0xff]   ;;  %v598_v50 = vld [vmem:[#allocation2 + $0x8] sm:$0xff] }
  0x4d   : > { %883 = vmatpush3.bf16.msra.mxu0 %v983_v4  ;;  %vm561_vm4 = vcmp.lt.s32.totalorder %v552_v30, 300  ;;  %v597_v48 = vld [vmem:[#allocation2] sm:$0xff] }
  0x4e   : > { %884 = vmatprep.subr.bf16.mxu0 %v1107_v3  ;;  %v574_v25 = vstv %s547_s1 }
  0x4f   : > { %569 = vperm.xlu0 %980, %v546_v10   ;;  %557 = vperm.xlu1 %981, %v542_v11  }
  0x51   : > { %885 = vmatpush3.bf16.msra.mxu0 %v984_v6 }
  0x52   : > { %886 = vmatprep.subr.bf16.mxu0 %v1107_v3 }
  0x53   : > { %583 = vperm.xlu0 %980, %v1315_v13   ;;  %588 = vperm.xlu1 %981, %v1318_v14  }
  0x55   : > { %887 = vmatpush3.bf16.msra.mxu0 %v985_v9 }
  0x56   : > { %888 = vmatprep.subr.bf16.mxu0 %v1107_v3 }
  0x59   : > { %889 = vmatpush3.bf16.msra.mxu0 %v986_v12 }
  0x5a   : > { %890 = vmatprep.subr.bf16.mxu0 %v1107_v3 }
  0x5d   : > { %891 = vmatpush3.bf16.msra.mxu0 %v987_v15  ;;  %v656_v15 = vmul.f32 (!%p866_p10), 30.0, %v1315_v13 }
  0x5e   : > { %892 = vmatprep.subr.bf16.mxu0 %v1107_v3 }
  0x61   : > { %893 = vmatpush3.bf16.msra.mxu0 %v988_v16  ;;  %v657_v16 = vmul.f32 (!%p866_p10), 30.0, %v1318_v14 }
  0x62   : > { %894 = vmatprep.subr.bf16.mxu0 %v1107_v3  ;;  %v605_v3 = vld [vmem:[#allocation3] sm:$0xff] }
  0x65   : > { %895 = vmatpush3.bf16.msra.mxu0 %v989_v17 }
  0x68   : > { %897 = vmatmul.mubr.bf16.vlgmr.msra.gmra.mrb[0].mxu0 %v990_v18 }
  0xca   : > { %v565_v19 = vpop.permute.xlu0 %564  ;;  %v555_v21 = vpop.permute.xlu1 %554 }
  0xcb   : > { %vm559_vm3 = vcmp.eq.s32.totalorder %v552_v30, %v555_v21 }
  0xce   : > { %v570_v26 = vpop.permute.xlu0 %569  ;;  %v558_v31 = vpop.permute.xlu1 %557 }
  0xcf   : > { %vm560_vm6 = vcmp.eq.s32.totalorder %v552_v30, %v558_v31 }
  0xd2   : > { %v584_v37 = vpop.permute.xlu0 %583  ;;  %v589_v42 = vpop.permute.xlu1 %588 }
 0x13b   : > { %v530_v24 = vpop.f32.mrb[0].mxu0 }
 0x13c   : > { %v863_v27 = vclamps-f32 %v530_v24, 1.0  ;;  %v898_v28 = vpop.f32.mrb[1].mxu0 }
 0x13d   : > { %v533_v29 = vpop.f32.mrb[2].mxu0 }
 0x13e   : > { %v575_v32 = vadd.f32 %v863_v27, %v574_v25  ;;  %v864_v33 = vclamps-f32 %v533_v29, 1.0  ;;  %v899_v34 = vpop.f32.mrb[3].mxu0  ;;  %vm572_vm2 = vcmp.gt.f32.partialorder %v863_v27, %v565_v19 }
 0x140   : > { %v577_v35 = vmul.f32 %v863_v27, %v575_v32  ;;  %v576_v36 = vadd.f32 %v864_v33, %v574_v25  ;;  %vm573_vm5 = vcmp.gt.f32.partialorder %v864_v33, %v570_v26 }
 0x142   : > { %v579_v38 = vsel %vm572_vm2, %v577_v35, %v863_v27  ;;  %v578_v39 = vmul.f32 %v864_v33, %v576_v36 }
 0x143   : > { %v591_v40 = vsel %vm559_vm3, %v584_v37, %v579_v38 }
 0x144   : > { %v593_v41 = vmul.f32 30.0, %v591_v40  ;;  %v580_v43 = vsel %vm573_vm5, %v578_v39, %v864_v33 }
 0x145   : > { %v592_v44 = vsel %vm560_vm6, %v589_v42, %v580_v43 }
 0x146   : > { %v595_v45 = vsel %vm561_vm4, %v593_v41, -1e+30  ;;  %v594_v46 = vmul.f32 30.0, %v592_v44 }
 0x147   : > { %599 = vmax.xlane.f32.xlu0 %v595_v45 }
 0x148   : > { %v596_v47 = vsel %vm561_vm4, %v594_v46, -1e+30 }
 0x149   : > { %601 = vmax.xlane.f32.xlu1 %v596_v47 }
 0x1d4   : > { %v600_v49 = vpop.xlane.xlu0 %599 }
 0x1d5   : > { %v603_v51 = vmax.f32 %v597_v48, %v600_v49 }
 0x1d6   : > { %v602_v52 = vpop.xlane.xlu1 %601 }
 0x1d7   : > { %v607_v53 = vsub.f32 %v597_v48, %v603_v51  ;;  %640 = vst.msk [vmem:[#allocation2] sm:$0xff] %vm637_vm7, %v603_v51  ;;  %v604_v54 = vmax.f32 %v598_v50, %v602_v52  ;;  %617 = vperm.xlu0 %980, %v603_v51  }
 0x1d9   : > { %v608_v55 = vsub.f32 %v598_v50, %v604_v54  ;;  %641 = vst.msk [vmem:[#allocation2 + $0x8] sm:$0xff] %vm637_vm7, %v604_v54  ;;  %622 = vperm.xlu1 %981, %v604_v54   ;;  %v609_v0 = vmul.f32 1.442695, %v607_v53 }
 0x1db   : > { %v611_v1 = vmul.f32 1.442695, %v608_v55 }
 0x1de   : > { %v646_v17 = vld [vmem:[#allocation2] sm:$0xff] (!%p866_p10) }
 0x1df   : > { %vm664_vm8 = vcmp.ge.f32.partialorder (!%p866_p10), %v656_v15, %v646_v17 }
 0x1e0   : > { %v647_v18 = vld [vmem:[#allocation2 + $0x8] sm:$0xff] (!%p866_p10)  ;;  %v867_v21 = vsel (!%p866_p10), %vm664_vm8, 1.0, %v1110_v20 }
 0x1e1   : > { %vm665_vm9 = vcmp.ge.f32.partialorder (!%p866_p10), %v657_v16, %v647_v18  ;;  %670 = vst.msk [vmem:[%s1302_s13] sm:$0xff] (!%p866_p10), %vm637_vm7, %v867_v21 }
 0x1e2   : > { %v868_v22 = vsel (!%p866_p10), %vm665_vm9, 1.0, %v1110_v20 }
 0x1e3   : > { %671 = vst.msk [vmem:[%s1302_s13 + $0x8] sm:$0xff] (!%p866_p10), %vm637_vm7, %v868_v22 }
 0x256   : > { %v618_v56 = vpop.permute.xlu0 %617 }
 0x257   : > { %v625_v57 = vsub.f32 %v595_v45, %v618_v56 }
 0x258   : > { %v623_v58 = vpop.permute.xlu1 %622 }
 0x259   : > { %v627_v59 = vmul.f32 1.442695, %v625_v57  ;;  %v626_v60 = vsub.f32 %v596_v47, %v623_v58 }
 0x25b   : > { %991 = vpow2.f32 %v627_v59  ;;  %v629_v61 = vmul.f32 1.442695, %v626_v60 }
 0x25d   : > { %993 = vpow2.f32 %v629_v61 }
 0x25e   : > { %995 = vpow2.f32 %v609_v0 }
 0x25f   : > { %997 = vpow2.f32 %v611_v1 }
 0x265   : > { %v992_v62 = vpop.eup %991 }
 0x266   : > { %631 = vadd.xlane.f32.xlu0 %v992_v62 }
 0x267   : > { %v994_v63 = vpop.eup %993 }
 0x268   : > { %633 = vadd.xlane.f32.xlu1 %v994_v63  ;;  %v996_v2 = vpop.eup %995 }
 0x269   : > { %v998_v4 = vpop.eup %997  ;;  %v613_v6 = vmul.f32 %v996_v2, %v605_v3 }
 0x26a   : > { %v614_v9 = vmul.f32 %v998_v4, %v606_v5 }
 0x2f2   : > { %645 = sbr.rel (%p866_p10) target bundleno = 786 (0x312), region = 56 }
 0x2f3   : > { %v632_v7 = vpop.xlane.xlu0 %631 }
 0x2f4   : > { %v635_v8 = vadd.f32 %v632_v7, %v613_v6 }
 0x2f5   : > { %v634_v10 = vpop.xlane.xlu1 %633 }
 0x2f6   : > { %638 = vst.msk [vmem:[#allocation3] sm:$0xff] %vm637_vm7, %v635_v8  ;;  %v636_v11 = vadd.f32 %v634_v10, %v614_v9 }
 0x2f8   : > { %639 = vst.msk [vmem:[#allocation3 + $0x8] sm:$0xff] %vm637_vm7, %v636_v11 }
 0x2fd   : > { %v648_v12 = vld [vmem:[#allocation3] sm:$0xff] }
 0x2fe   : > { %999 = vlog2.f32 %v648_v12 }
 0x2ff   : > { %v649_v19 = vld [vmem:[#allocation3 + $0x8] sm:$0xff] }
 0x300   : > { %1001 = vlog2.f32 %v649_v19 }
 0x308   : > { %v1000_v23 = vpop.eup %999 }
 0x309   : > { %v651_v24 = vmul.f32 0.6931472, %v1000_v23 }
 0x30a   : > { %v1002_v13 = vpop.eup %1001 }
 0x30b   : > { %v653_v14 = vmul.f32 0.6931472, %v1002_v13  ;;  %v654_v25 = vadd.f32 %v651_v24, %v646_v17 }
 0x30d   : > { %v655_v26 = vadd.f32 %v653_v14, %v647_v18  ;;  %v658_v27 = vsub.f32 %v654_v25, %v656_v15 }
 0x30f   : > { %v659_v28 = vsub.f32 %v655_v26, %v657_v16  ;;  %660 = vst.msk [vmem:[%s1297_s23] sm:$0xff] %vm637_vm7, %v658_v27 }
 0x311   : > { %661 = vst.msk [vmem:[%s1297_s23 + $0x8] sm:$0xff] %vm637_vm7, %v659_v28 }
 0x312 PF: > { %s22_s10 = sadd.s32 1, %s1099_s10   ;;  %s1381_s22 = sld [smem:[#allocation8_spill]] }
 0x313   : > { %p19_p6 = scmp.ge.s32.totalorder %s22_s10, 8   ;;  %s1382_s26 = smov %s1075_s27 }
 0x314   : > { %s1383_s27 = smov %s1079_s28  ;;  %s1384_s28 = smov %s1212_s16 }
 0x315   : > { %s1385_s29 = smov %s1091_s8  ;;  %s1386_s30 = smov %s1095_s9 }
 0x316   : > { %s1387_s8 = smov %s1390_s11  ;;  %21 = sbr.rel (!%p19_p6) target bundleno = 8 (0x8), region = 116 }
 0x318   : > { %s1388_s9 = smov %s1381_s22 }
 0x31d   :  { %711 = vsyncpa [#allocation6], 1 }
 0x31e   :  { %713 = vsyncpa [#allocation6 + $0x1], 1 }

</bundles_post_ra>
